<compile_context>
chip_gen: v7x
topology: tpu7x:2x2x1
jax: 0.10.0
libtpu: 0.0.40
codegen_flags: <defaults>
</compile_context>

<pallas_src>
import jax
import jax.numpy as jnp
from jax.experimental import pallas as pl
from jax.experimental.pallas import tpu as pltpu

HEIGHT = 19
WIDTH = 52
IN_DIM = HEIGHT * WIDTH          # 988
H1 = 256
H2 = 128
OUT_DIM = 4
OUT_DIM_PAD = 128                # lane-aligned width for the last matmul (compute only)


def _round_up(x, m):
    return (x + m - 1) // m * m


def _pick_tile(n_pad, tm_max, min_two_step_tile=256):
    """Pick the batch tile: a multiple of 16 that divides n_pad, capped at tm_max.

    Prefers a tiling with >= 2 grid steps (so the "parallel" batch axis can shard
    across both TensorCores on v7x) as long as the tile stays reasonably large;
    otherwise takes the largest tile (fewest grid steps -> least per-step overhead).
    """
    cands = [d for d in range(16, min(n_pad, tm_max) + 1, 16) if n_pad % d == 0]
    if not cands:
        return n_pad
    two_step = [d for d in cands if n_pad // d >= 2]
    if two_step and max(two_step) >= min_two_step_tile:
        return max(two_step)
    return max(cands)


def dnn_kernel(x_ref, w1_ref, b1_ref, w2_ref, b2_ref, w3_ref, b3_ref, out_ref):
    # x_ref: (TM, 988) f32 straight from HBM. Cast to bf16 in-register here so the
    # cast/pack is fused into the kernel (no separate XLA op writing x back to HBM).
    x = x_ref[...].astype(jnp.bfloat16)

    h1 = jnp.dot(x, w1_ref[...], preferred_element_type=jnp.float32) + b1_ref[...]
    h1 = jnp.maximum(h1, 0.0).astype(jnp.bfloat16)            # dense1 + ReLU

    h2 = jnp.dot(h1, w2_ref[...], preferred_element_type=jnp.float32) + b2_ref[...]
    h2 = jnp.maximum(h2, 0.0).astype(jnp.bfloat16)            # dense2 + ReLU

    # pred_layer: compute with N padded to 128 (lane-aligned MXU), store only 4 cols.
    preds = jnp.dot(h2, w3_ref[...], preferred_element_type=jnp.float32) + b3_ref[...]
    out_ref[...] = preds[:, :OUT_DIM].astype(out_ref.dtype)


def dnn_forward(x_nchw, packed_params, *, tm=1024):
    """x_nchw: (N, C, H, W) with C*H*W == 988. packed_params from pack_params()."""
    n = x_nchw.shape[0]
    x_flat = x_nchw.reshape(n, -1).astype(jnp.float32)
    assert x_flat.shape[1] == IN_DIM, f"expected {IN_DIM} features, got {x_flat.shape[1]}"

    w1, b1, w2, b2, w3, b3 = packed_params

    # Pad batch only to a multiple of 16 (bf16 sublane alignment of the in-kernel
    # activations); at most 15 wasted rows. No pad op is emitted when n % 16 == 0.
    n_pad = _round_up(n, 16)
    if n_pad != n:
        x_flat = jnp.pad(x_flat, ((0, n_pad - n), (0, 0)))

    tm_eff = _pick_tile(n_pad, tm)
    grid = (n_pad // tm_eff,)

    flops = 2 * n_pad * (IN_DIM * H1 + H1 * H2 + H2 * OUT_DIM_PAD)
    bytes_accessed = (
        n_pad * IN_DIM * 4                           # x (f32, read once)
        + (w1.size + w2.size + w3.size) * 2          # weights (bf16)
        + (b1.size + b2.size + b3.size) * 4          # biases (f32)
        + n_pad * OUT_DIM * 4                        # output (f32, only 4 cols)
    )

    out = pl.pallas_call(
        dnn_kernel,
        out_shape=jax.ShapeDtypeStruct((n_pad, OUT_DIM), jnp.float32),
        grid=grid,
        in_specs=[
            # x tile: pipelined along the batch grid axis (double-buffered DMA
            # overlaps with MXU compute). Last dim 988 equals the full array dim.
            pl.BlockSpec((tm_eff, IN_DIM), lambda i: (i, 0)),
            # Weights / biases: constant index_map -> DMA'd once, VMEM-resident.
            pl.BlockSpec((IN_DIM, H1), lambda i: (0, 0)),
            pl.BlockSpec((1, H1), lambda i: (0, 0)),
            pl.BlockSpec((H1, H2), lambda i: (0, 0)),
            pl.BlockSpec((1, H2), lambda i: (0, 0)),
            pl.BlockSpec((H2, OUT_DIM_PAD), lambda i: (0, 0)),
            pl.BlockSpec((1, OUT_DIM_PAD), lambda i: (0, 0)),
        ],
        # Output last dim 4 equals the full array dim -> legal; writeback is 16 B/row.
        out_specs=pl.BlockSpec((tm_eff, OUT_DIM), lambda i: (i, 0)),
        compiler_params=pltpu.CompilerParams(
            dimension_semantics=("parallel",),
            vmem_limit_bytes=32 * 1024 * 1024,
        ),
        cost_estimate=pl.CostEstimate(
            flops=flops, transcendentals=0, bytes_accessed=bytes_accessed),
    )(x_flat, w1, b1, w2, b2, w3, b3)

    # Slice off batch padding rows.
    return out[:n]


def init_params(key):
    """Logical-shape params: xavier-uniform weights stored as (in, out), biases 0.01."""
    def xavier(k, fan_in, fan_out):
        limit = jnp.sqrt(6.0 / (fan_in + fan_out))
        return jax.random.uniform(k, (fan_in, fan_out), jnp.float32, -limit, limit)

    k1, k2, k3 = jax.random.split(key, 3)
    w1 = xavier(k1, IN_DIM, H1)
    b1 = jnp.full((1, H1), 0.01, jnp.float32)
    w2 = xavier(k2, H1, H2)
    b2 = jnp.full((1, H2), 0.01, jnp.float32)
    w3 = xavier(k3, H2, OUT_DIM)
    b3 = jnp.full((1, OUT_DIM), 0.01, jnp.float32)
    return (w1, b1, w2, b2, w3, b3)


def pack_params(params):
    """Kernel-ready params: bf16 weights (w1 kept at K=988), pred-layer N padded to 128."""
    w1, b1, w2, b2, w3, b3 = params
    w1p = w1.astype(jnp.bfloat16)                                   # (988, 256)
    w2p = w2.astype(jnp.bfloat16)                                   # (256, 128)
    w3p = (jnp.zeros((H2, OUT_DIM_PAD), jnp.bfloat16)
           .at[:, :OUT_DIM].set(w3.astype(jnp.bfloat16)))           # (128, 128)
    b3p = jnp.zeros((1, OUT_DIM_PAD), jnp.float32).at[:, :OUT_DIM].set(b3)
    return (w1p, b1, w2p, b2, w3p, b3p)


if __name__ == "__main__":
    key = jax.random.PRNGKey(0)
    k_x, k_p = jax.random.split(key)

    # Small input consistent with the module: (batch=2, C=1, H=19, W=52) NCHW.
    x = jax.random.normal(k_x, (2, 1, HEIGHT, WIDTH), jnp.float32)
    params = init_params(k_p)
    packed = pack_params(params)

    preds = dnn_forward(x, packed)
    preds = jax.block_until_ready(preds)
    assert preds.shape == (2, OUT_DIM)

    # Reference mimicking the kernel's bf16-weight / f32-accumulation math.
    xf = x.reshape(x.shape[0], -1)
    w1, b1, w2, b2, w3, b3 = params
    xb = xf.astype(jnp.bfloat16).astype(jnp.float32)
    w1b = w1.astype(jnp.bfloat16).astype(jnp.float32)
    w2b = w2.astype(jnp.bfloat16).astype(jnp.float32)
    w3b = w3.astype(jnp.bfloat16).astype(jnp.float32)
    h1 = jnp.maximum(xb @ w1b + b1, 0.0).astype(jnp.bfloat16).astype(jnp.float32)
    h2 = jnp.maximum(h1 @ w2b + b2, 0.0).astype(jnp.bfloat16).astype(jnp.float32)
    ref = h2 @ w3b + b3
    assert jnp.allclose(preds, ref, atol=1e-2, rtol=1e-2), (
        f"max abs err {jnp.max(jnp.abs(preds - ref))}")

    print("KERNEL_OK")
</pallas_src>

<mosaic_0001>
module attributes {stable_mosaic.version = 11 : i64} {
  func.func @dnn_kernel(%arg0: i32, %arg1: memref<16x988xf32, #tpu.memory_space<vmem>>, %arg2: memref<988x256xbf16, #tpu.memory_space<vmem>>, %arg3: memref<1x256xf32, #tpu.memory_space<vmem>>, %arg4: memref<256x128xbf16, #tpu.memory_space<vmem>>, %arg5: memref<1x128xf32, #tpu.memory_space<vmem>>, %arg6: memref<128x128xbf16, #tpu.memory_space<vmem>>, %arg7: memref<1x128xf32, #tpu.memory_space<vmem>>, %arg8: memref<16x4xf32, #tpu.memory_space<vmem>>) attributes {dimension_semantics = [#tpu.dimension_semantics<parallel>], iteration_bounds = array<i64: 1>, scalar_prefetch = 0 : i64, scratch_operands = 0 : i64, tpu.core_type = #tpu.core_type<tc>, window_params = [{transform_indices = @transform_0, window_bounds = array<i64: 16, 988>}, {pipeline_mode = #tpu.pipeline_mode<synchronous>, transform_indices = @transform_1, window_bounds = array<i64: 988, 256>}, {pipeline_mode = #tpu.pipeline_mode<synchronous>, transform_indices = @transform_2, window_bounds = array<i64: 1, 256>}, {pipeline_mode = #tpu.pipeline_mode<synchronous>, transform_indices = @transform_3, window_bounds = array<i64: 256, 128>}, {pipeline_mode = #tpu.pipeline_mode<synchronous>, transform_indices = @transform_4, window_bounds = array<i64: 1, 128>}, {pipeline_mode = #tpu.pipeline_mode<synchronous>, transform_indices = @transform_5, window_bounds = array<i64: 128, 128>}, {pipeline_mode = #tpu.pipeline_mode<synchronous>, transform_indices = @transform_6, window_bounds = array<i64: 1, 128>}, {transform_indices = @transform_7, window_bounds = array<i64: 16, 4>}]} {
    %c0 = arith.constant 0 : index
    %c0_0 = arith.constant 0 : index
    %0 = vector.load %arg1[%c0, %c0_0] : memref<16x988xf32, #tpu.memory_space<vmem>>, vector<16x988xf32>
    %1 = arith.truncf %0 : vector<16x988xf32> to vector<16x988xbf16>
    %c0_1 = arith.constant 0 : index
    %c0_2 = arith.constant 0 : index
    %2 = vector.load %arg2[%c0_1, %c0_2] : memref<988x256xbf16, #tpu.memory_space<vmem>>, vector<988x256xbf16>
    %cst = arith.constant dense<0.000000e+00> : vector<16x256xf32>
    %3 = tpu.matmul %1, %2, %cst {dimension_numbers = #tpu.dot_dimension_numbers<[1], [0], [0], [1], [0, 0, 1, 1], [], []>} : vector<16x988xbf16>, vector<988x256xbf16>, vector<16x256xf32> -> vector<16x256xf32>
    %c0_3 = arith.constant 0 : index
    %c0_4 = arith.constant 0 : index
    %4 = vector.load %arg3[%c0_3, %c0_4] : memref<1x256xf32, #tpu.memory_space<vmem>>, vector<1x256xf32>
    %5 = vector.broadcast %4 : vector<1x256xf32> to vector<16x256xf32>
    %6 = arith.addf %3, %5 : vector<16x256xf32>
    %cst_5 = arith.constant 0.000000e+00 : f32
    %7 = vector.broadcast %cst_5 : f32 to vector<16x256xf32>
    %8 = arith.maximumf %6, %7 : vector<16x256xf32>
    %9 = arith.truncf %8 : vector<16x256xf32> to vector<16x256xbf16>
    %c0_6 = arith.constant 0 : index
    %c0_7 = arith.constant 0 : index
    %10 = vector.load %arg4[%c0_6, %c0_7] : memref<256x128xbf16, #tpu.memory_space<vmem>>, vector<256x128xbf16>
    %cst_8 = arith.constant dense<0.000000e+00> : vector<16x128xf32>
    %11 = tpu.matmul %9, %10, %cst_8 {dimension_numbers = #tpu.dot_dimension_numbers<[1], [0], [0], [1], [0, 0, 1, 1], [], []>} : vector<16x256xbf16>, vector<256x128xbf16>, vector<16x128xf32> -> vector<16x128xf32>
    %c0_9 = arith.constant 0 : index
    %c0_10 = arith.constant 0 : index
    %12 = vector.load %arg5[%c0_9, %c0_10] : memref<1x128xf32, #tpu.memory_space<vmem>>, vector<1x128xf32>
    %13 = vector.broadcast %12 : vector<1x128xf32> to vector<16x128xf32>
    %14 = arith.addf %11, %13 : vector<16x128xf32>
    %cst_11 = arith.constant 0.000000e+00 : f32
    %15 = vector.broadcast %cst_11 : f32 to vector<16x128xf32>
    %16 = arith.maximumf %14, %15 : vector<16x128xf32>
    %17 = arith.truncf %16 : vector<16x128xf32> to vector<16x128xbf16>
    %c0_12 = arith.constant 0 : index
    %c0_13 = arith.constant 0 : index
    %18 = vector.load %arg6[%c0_12, %c0_13] : memref<128x128xbf16, #tpu.memory_space<vmem>>, vector<128x128xbf16>
    %cst_14 = arith.constant dense<0.000000e+00> : vector<16x128xf32>
    %19 = tpu.matmul %17, %18, %cst_14 {dimension_numbers = #tpu.dot_dimension_numbers<[1], [0], [0], [1], [0, 0, 1, 1], [], []>} : vector<16x128xbf16>, vector<128x128xbf16>, vector<16x128xf32> -> vector<16x128xf32>
    %c0_15 = arith.constant 0 : index
    %c0_16 = arith.constant 0 : index
    %20 = vector.load %arg7[%c0_15, %c0_16] : memref<1x128xf32, #tpu.memory_space<vmem>>, vector<1x128xf32>
    %21 = vector.broadcast %20 : vector<1x128xf32> to vector<16x128xf32>
    %22 = arith.addf %19, %21 : vector<16x128xf32>
    %23 = vector.extract_strided_slice %22 {offsets = [0, 0], sizes = [16, 4], strides = [1, 1]} : vector<16x128xf32> to vector<16x4xf32>
    %c0_17 = arith.constant 0 : index
    %c0_18 = arith.constant 0 : index
    %24 = vector.load %arg8[%c0_17, %c0_18] : memref<16x4xf32, #tpu.memory_space<vmem>>, vector<16x4xf32>
    tpu.vector_store %arg8[%c0_17, %c0_18], %23 {strides = array<i32>} : memref<16x4xf32, #tpu.memory_space<vmem>>, vector<16x4xf32>,
    return
  }
  func.func @transform_0(%arg0: i32) -> (i32, i32) {
    %c0_i32 = arith.constant 0 : i32
    %c0_i32_0 = arith.constant 0 : i32
    return %arg0, %c0_i32 : i32, i32
  }
  func.func @transform_1(%arg0: i32) -> (i32, i32) {
    %c0_i32 = arith.constant 0 : i32
    %c0_i32_0 = arith.constant 0 : i32
    %c0_i32_1 = arith.constant 0 : i32
    return %c0_i32, %c0_i32_0 : i32, i32
  }
  func.func @transform_2(%arg0: i32) -> (i32, i32) {
    %c0_i32 = arith.constant 0 : i32
    %c0_i32_0 = arith.constant 0 : i32
    %c0_i32_1 = arith.constant 0 : i32
    return %c0_i32, %c0_i32_0 : i32, i32
  }
  func.func @transform_3(%arg0: i32) -> (i32, i32) {
    %c0_i32 = arith.constant 0 : i32
    %c0_i32_0 = arith.constant 0 : i32
    %c0_i32_1 = arith.constant 0 : i32
    return %c0_i32, %c0_i32_0 : i32, i32
  }
  func.func @transform_4(%arg0: i32) -> (i32, i32) {
    %c0_i32 = arith.constant 0 : i32
    %c0_i32_0 = arith.constant 0 : i32
    %c0_i32_1 = arith.constant 0 : i32
    return %c0_i32, %c0_i32_0 : i32, i32
  }
  func.func @transform_5(%arg0: i32) -> (i32, i32) {
    %c0_i32 = arith.constant 0 : i32
    %c0_i32_0 = arith.constant 0 : i32
    %c0_i32_1 = arith.constant 0 : i32
    return %c0_i32, %c0_i32_0 : i32, i32
  }
  func.func @transform_6(%arg0: i32) -> (i32, i32) {
    %c0_i32 = arith.constant 0 : i32
    %c0_i32_0 = arith.constant 0 : i32
    %c0_i32_1 = arith.constant 0 : i32
    return %c0_i32, %c0_i32_0 : i32, i32
  }
  func.func @transform_7(%arg0: i32) -> (i32, i32) {
    %c0_i32 = arith.constant 0 : i32
    %c0_i32_0 = arith.constant 0 : i32
    return %arg0, %c0_i32 : i32, i32
  }
}

</mosaic_0001>

<bundles_post_ra>
// kernel: tpu_custom_call.1
= control target key start
LH: loop header
LB: loop body
LE: loop exit
PB: predicated region body
PF: predicated region fallthrough
CT: control target
= control target key end

     0   :  { %12 = vsyncpa [#allocation3], 0  ;;  %s2003_s0 = inlined_call_operand.hbm [shape: f32[16,988], index: 0, kind: input, shape index: {}]   ;;  %s2004_s1 = inlined_call_operand.hbm [shape: bf16[988,256], index: 1, kind: input, shape index: {}]   ;;  %s2005_s2 = inlined_call_operand.vmem [shape: f32[1,256], index: 2, kind: input, shape index: {}]   ;;  %s2006_s3 = inlined_call_operand.hbm [shape: bf16[256,128], index: 3, kind: input, shape index: {}]   ;;  %s2007_s4 = inlined_call_operand.vmem [shape: f32[1,128], index: 4, kind: input, shape index: {}]   ;;  %s2008_s5 = inlined_call_operand.hbm [shape: bf16[128,128], index: 5, kind: input, shape index: {}]   ;;  %s2009_s6 = inlined_call_operand.vmem [shape: f32[1,128], index: 6, kind: input, shape index: {}]   ;;  %s2010_s7 = inlined_call_operand.vmem [shape: f32[16,4], index: 7, kind: output, shape index: {}]  }
   0x1   :  { %13 = vsyncpa [#allocation5], 0 }
   0x2   :  { %14 = vsyncpa [#allocation8], 0  ;;  %s1884_s24 = smov [#allocation4]   ;;  %s1790_s28 = scalar_lea.hbm %s2004_s1, 15872 }
   0x3   :  { %s32_s25 = sshll.u32 %s1884_s24, 4  ;;  %p1791_p0 = scmp.ne.s32.totalorder %s2004_s1, %s1790_s28  ;;  %s33_s25 = int_to_ptr.vmem [resolvable:$true] %s32_s25 }
   0x4   :  { %p1794_p1 = scmp.lt.u32.totalorder %s1790_s28, %s2004_s1 }
   0x6   :  { %p1796_p2 = pnand %p1794_p1, %p1791_p0 }
   0x8   :  { %1799 = shalt.err (!%p1796_p2)
}
   0x9   :  { %s1800_s10 = scalar_lea.vmem %s33_s25, 15872  ;;  %p1805_p4 = scmp.lt.s32.totalorder %s33_s25, %s33_s25 }
   0xa   :  { %p1801_p3 = scmp.ne.s32.totalorder %s33_s25, %s1800_s10  ;;  %p1806_p5 = scmp.lt.s32.totalorder %s1800_s10, %s1800_s10 }
   0xc   :  { %p1807_p6 = por %p1806_p5, %p1805_p4 }
   0xe   :  { %p1808_p7 = pnand %p1807_p6, %p1801_p3 }
  0x10   :  { %1811 = shalt.err (!%p1808_p7)
}
  0x11   :  { %s1885_s11 = smov 128   ;;  %s1886_s12 = smov 8  }
  0x12   :  { %38 = dma.hbm_to_vmem [thread:$0]  %s2004_s1, 15872, %s33_s25, [#allocation5], %s1885_s11, %s1885_s11, %s1886_s12  }
  0x13   :  { %s1887_s15 = smov [#allocation2]   ;;  %s1812_s19 = scalar_lea.hbm %s2003_s0, 2048 }
  0x14   :  { %s20_s16 = sshll.u32 %s1887_s15, 4  ;;  %p1813_p8 = scmp.ne.s32.totalorder %s2003_s0, %s1812_s19  ;;  %s21_s16 = int_to_ptr.vmem [resolvable:$true] %s20_s16 }
  0x15   :  { %p1816_p9 = scmp.lt.u32.totalorder %s1812_s19, %s2003_s0 }
  0x17   :  { %p1818_p10 = pnand %p1816_p9, %p1813_p8 }
  0x19   :  { %1821 = shalt.err (!%p1818_p10)
}
  0x1a   :  { %s1822_s24 = scalar_lea.vmem %s21_s16, 2048  ;;  %p1827_p12 = scmp.lt.s32.totalorder %s21_s16, %s21_s16 }
  0x1b   :  { %p1823_p11 = scmp.ne.s32.totalorder %s21_s16, %s1822_s24  ;;  %p1828_p13 = scmp.lt.s32.totalorder %s1822_s24, %s1822_s24 }
  0x1d   :  { %p1829_p0 = por %p1828_p13, %p1827_p12 }
  0x1f   :  { %p1830_p1 = pnand %p1829_p0, %p1823_p11 }
  0x21   :  { %1833 = shalt.err (!%p1830_p1)
}
  0x22   :  { %s1888_s1 = smov 1024   ;;  %s1889_s25 = smov 64  }
  0x23   :  { %26 = dma.hbm_to_vmem [thread:$0]  %s2003_s0, 2048, %s21_s16, [#allocation3], %s1888_s1, %s1888_s1, %s1889_s25  }
  0x24   :  { %s1890_s28 = smov [#allocation6]   ;;  %s1891_s30 = smov [#allocation7]  }
  0x25   :  { %s46_s29 = sshll.u32 %s1890_s28, 4  ;;  %s60_s8 = sshll.u32 %s1891_s30, 4  ;;  %s47_s29 = int_to_ptr.vmem [resolvable:$true] %s46_s29  ;;  %s61_s8 = int_to_ptr.vmem [resolvable:$true] %s60_s8 }
  0x26   :  { %s1834_s11 = scalar_lea.hbm %s2006_s3, 2048 }
  0x27   :  { %p1835_p2 = scmp.ne.s32.totalorder %s2006_s3, %s1834_s11  ;;  %p1838_p3 = scmp.lt.u32.totalorder %s1834_s11, %s2006_s3 }
  0x29   :  { %p1840_p4 = pnand %p1838_p3, %p1835_p2 }
  0x2b   :  { %1843 = shalt.err (!%p1840_p4)
}
  0x2c   :  { %s1844_s0 = scalar_lea.vmem %s47_s29, 2048  ;;  %p1849_p6 = scmp.lt.s32.totalorder %s47_s29, %s47_s29 }
  0x2d   :  { %p1845_p5 = scmp.ne.s32.totalorder %s47_s29, %s1844_s0  ;;  %p1850_p7 = scmp.lt.s32.totalorder %s1844_s0, %s1844_s0 }
  0x2f   :  { %p1851_p8 = por %p1850_p7, %p1849_p6 }
  0x31   :  { %p1852_p9 = pnand %p1851_p8, %p1845_p5 }
  0x33   :  { %1855 = shalt.err (!%p1852_p9)
}
  0x34   :  { %s1892_s16 = smov 4   ;;  %s1856_s21 = scalar_lea.hbm %s2008_s5, 1024 }
  0x35   :  { %52 = dma.hbm_to_vmem [thread:$0]  %s2006_s3, 2048, %s47_s29, [#allocation5], %s1889_s25, %s1889_s25, %s1892_s16  }
  0x36   :  { %p1857_p10 = scmp.ne.s32.totalorder %s2008_s5, %s1856_s21  ;;  %p1860_p11 = scmp.lt.u32.totalorder %s1856_s21, %s2008_s5 }
  0x38   :  { %p1862_p12 = pnand %p1860_p11, %p1857_p10 }
  0x3a   :  { %1865 = shalt.err (!%p1862_p12)
}
  0x3b   :  { %s1866_s26 = scalar_lea.vmem %s61_s8, 1024  ;;  %p1871_p0 = scmp.lt.s32.totalorder %s61_s8, %s61_s8 }
  0x3c   :  { %p1867_p13 = scmp.ne.s32.totalorder %s61_s8, %s1866_s26  ;;  %p1872_p1 = scmp.lt.s32.totalorder %s1866_s26, %s1866_s26 }
  0x3e   :  { %p1873_p2 = por %p1872_p1, %p1871_p0 }
  0x40   :  { %p1874_p3 = pnand %p1873_p2, %p1867_p13 }
  0x42   :  { %1877 = shalt.err (!%p1874_p3)
}
  0x43   :  { %66 = dma.hbm_to_vmem [thread:$0]  %s2008_s5, 1024, %s61_s8, [#allocation8], %s1889_s25, %s1889_s25, %s1892_s16  }
  0x44   :  { %1878 = dma.done.wait [#allocation3], 2048  }
  0x45   :  { %1879 = vsyncadd [#allocation3], 4294965248 }
  0x46   :  { %1880 = dma.done.wait [#allocation5], 17920  }
  0x47   :  { %1881 = vsyncadd [#allocation5], 4294949376 }
  0x48   :  { %1882 = dma.done.wait [#allocation8], 1024  }
  0x49   :  { %1883 = vsyncadd [#allocation8], 4294966272  ;;  %v1580_v0 = vld [vmem:[#allocation4 + $0x104] ss:$8 sps:$4 sm:$0xff]   ;;  %v1582_v1 = vld [vmem:[#allocation4 + $0x100] ss:$8 sps:$4 sm:$0xff]  }
  0x4a   :  { %914 = vmatprep.subr.bf16.mxu0 %v1580_v0  ;;  %v1583_v2 = vld [vmem:[#allocation4 + $0x114] ss:$8 sps:$4 sm:$0xff]   ;;  %v1585_v3 = vld [vmem:[#allocation4 + $0x110] ss:$8 sps:$4 sm:$0xff]   ;;  %v1586_v4 = vld [vmem:[#allocation4 + $0x124] ss:$8 sps:$4 sm:$0xff]  }
  0x4b   :  { %915 = vmatpush1.bf16.msra.mxu0 %v1582_v1  ;;  %v1588_v5 = vld [vmem:[#allocation4 + $0x120] ss:$8 sps:$4 sm:$0xff]   ;;  %v1589_v6 = vld [vmem:[#allocation4 + $0x134] ss:$8 sps:$4 sm:$0xff]   ;;  %v1591_v7 = vld [vmem:[#allocation4 + $0x130] ss:$8 sps:$4 sm:$0xff]  }
  0x4c   :  { %916 = vmatprep.subr.bf16.mxu0 %v1583_v2  ;;  %v1592_v8 = vld [vmem:[#allocation4 + $0x144] ss:$8 sps:$4 sm:$0xff]   ;;  %v1594_v9 = vld [vmem:[#allocation4 + $0x140] ss:$8 sps:$4 sm:$0xff]   ;;  %v1595_v10 = vld [vmem:[#allocation4 + $0x154] ss:$8 sps:$4 sm:$0xff]  }
  0x4d   :  { %v1597_v11 = vld [vmem:[#allocation4 + $0x150] ss:$8 sps:$4 sm:$0xff]   ;;  %v1598_v12 = vld [vmem:[#allocation4 + $0x164] ss:$8 sps:$4 sm:$0xff]   ;;  %v1600_v16 = vld [vmem:[#allocation4 + $0x160] ss:$8 sps:$4 sm:$0xff]  }
  0x4e   :  { %v85_v13 = vld [vmem:[#allocation2 + $0x18] sm:$0xff]  ;;  %v1604_v19 = vld [vmem:[#allocation4 + $0x184] ss:$8 sps:$4 sm:$0xff]   ;;  %v1606_v20 = vld [vmem:[#allocation4 + $0x180] ss:$8 sps:$4 sm:$0xff]   ;;  %vm860_vm0 = vcmask 752640  }
  0x4f   :  { %917 = vmatpush1.bf16.msra.mxu0 %v1585_v3  ;;  %v93_v14 = vld [vmem:[#allocation2 + $0x58] sm:$0xff]  ;;  %v1610_v23 = vld [vmem:[#allocation4 + $0x1a4] ss:$8 sps:$4 sm:$0xff]   ;;  %v1612_v24 = vld [vmem:[#allocation4 + $0x1a0] ss:$8 sps:$4 sm:$0xff]   ;;  %vm864_vm1 = vcmask 1045504  }
  0x50   :  { %918 = vmatprep.subr.bf16.mxu0 %v1586_v4  ;;  %v101_v15 = vpack.c.bf16 %v93_v14, %v85_v13  ;;  %v1601_v17 = vld [vmem:[#allocation4 + $0x174] ss:$8 sps:$4 sm:$0xff]   ;;  %v1603_v18 = vld [vmem:[#allocation4 + $0x170] ss:$8 sps:$4 sm:$0xff]   ;;  %v1667_v26 = vld [vmem:[#allocation4 + $0x4] ss:$8 sps:$4 sm:$0xff]  }
  0x51   :  { %v1607_v21 = vld [vmem:[#allocation4 + $0x194] ss:$8 sps:$4 sm:$0xff]   ;;  %v1609_v22 = vld [vmem:[#allocation4 + $0x190] ss:$8 sps:$4 sm:$0xff]   ;;  %v1669_v27 = vld [vmem:[#allocation4] ss:$8 sps:$4 sm:$0xff]   ;;  %871 = vmatprep.subr.bf16.mxu1 %v1667_v26 }
  0x52   :  { %946 = vmatprep.mubr.bf16.mxu0 %v101_v15  ;;  %v1613_v25 = vld [vmem:[#allocation4 + $0x1b4] ss:$8 sps:$4 sm:$0xff]   ;;  %v1615_v28 = vld [vmem:[#allocation4 + $0x1b0] ss:$8 sps:$4 sm:$0xff]   ;;  %872 = vmatpush1.bf16.msra.mxu1 %v1669_v27  ;;  %v1616_v31 = vld [vmem:[#allocation4 + $0x1c4] ss:$8 sps:$4 sm:$0xff]  }
  0x53   :  { %919 = vmatpush1.bf16.msra.mxu0 %v1588_v5  ;;  %v1673_v29 = vld [vmem:[#allocation4 + $0x14] ss:$8 sps:$4 sm:$0xff]   ;;  %v1675_v30 = vld [vmem:[#allocation4 + $0x10] ss:$8 sps:$4 sm:$0xff]   ;;  %v1618_v32 = vld [vmem:[#allocation4 + $0x1c0] ss:$8 sps:$4 sm:$0xff]  }
  0x54   :  { %920 = vmatprep.subr.bf16.mxu0 %v1589_v6  ;;  %873 = vmatprep.subr.bf16.mxu1 %v1673_v29  ;;  %v1679_v33 = vld [vmem:[#allocation4 + $0x24] ss:$8 sps:$4 sm:$0xff]   ;;  %v1619_v34 = vld [vmem:[#allocation4 + $0x1d4] ss:$8 sps:$4 sm:$0xff]   ;;  %v1681_v35 = vld [vmem:[#allocation4 + $0x20] ss:$8 sps:$4 sm:$0xff]  }
  0x55   :  { %v1685_v36 = vld [vmem:[#allocation4 + $0x34] ss:$8 sps:$4 sm:$0xff]   ;;  %v1621_v37 = vld [vmem:[#allocation4 + $0x1d0] ss:$8 sps:$4 sm:$0xff]   ;;  %v1622_v38 = vld [vmem:[#allocation4 + $0x1e4] ss:$8 sps:$4 sm:$0xff]  }
  0x56   :  { %874 = vmatpush1.bf16.msra.mxu1 %v1675_v30  ;;  %v1687_v39 = vld [vmem:[#allocation4 + $0x30] ss:$8 sps:$4 sm:$0xff]   ;;  %v1691_v40 = vld [vmem:[#allocation4 + $0x44] ss:$8 sps:$4 sm:$0xff]   ;;  %v1624_v41 = vld [vmem:[#allocation4 + $0x1e0] ss:$8 sps:$4 sm:$0xff]  }
  0x57   :  { %921 = vmatpush1.bf16.msra.mxu0 %v1591_v7  ;;  %875 = vmatprep.subr.bf16.mxu1 %v1679_v33  ;;  %v1625_v42 = vld [vmem:[#allocation4 + $0x1f4] ss:$8 sps:$4 sm:$0xff]   ;;  %v1693_v43 = vld [vmem:[#allocation4 + $0x40] ss:$8 sps:$4 sm:$0xff]   ;;  %v1627_v45 = vld [vmem:[#allocation4 + $0x1f0] ss:$8 sps:$4 sm:$0xff]  }
  0x58   :  { %922 = vmatprep.subr.bf16.mxu0 %v1592_v8  ;;  %v1697_v44 = vld [vmem:[#allocation4 + $0x54] ss:$8 sps:$4 sm:$0xff]   ;;  %v1630_v47 = vld [vmem:[#allocation4 + $0x204] ss:$8 sps:$4 sm:$0xff]   ;;  %v1699_v51 = vld [vmem:[#allocation4 + $0x50] ss:$8 sps:$4 sm:$0xff]  }
  0x59   :  { %v84_v46 = vld [vmem:[#allocation2 + $0x10] sm:$0xff]  ;;  %v87_v49 = vld [vmem:[#allocation2 + $0x28] sm:$0xff]  ;;  %v82_v33 = vld [vmem:[#allocation2] sm:$0xff]  ;;  %vm1894_vm2 = vmmov 0   ;;  %vm1340_vm3 = vcmask 31744  }
  0x5a   :  { %876 = vmatpush1.bf16.msra.mxu1 %v1681_v35  ;;  %v92_v48 = vld [vmem:[#allocation2 + $0x50] sm:$0xff]  ;;  %v95_v50 = vld [vmem:[#allocation2 + $0x68] sm:$0xff]  ;;  %v1766_v35 = vld [vmem:[#allocation6 + $0x40] sm:$0xff]  }
  0x5b   :  { %923 = vmatpush1.bf16.msra.mxu0 %v1594_v9  ;;  %877 = vmatprep.subr.bf16.mxu1 %v1685_v36  ;;  %v1703_v52 = vld [vmem:[#allocation4 + $0x64] ss:$8 sps:$4 sm:$0xff]   ;;  %v100_v53 = vpack.c.bf16 %v92_v48, %v84_v46  ;;  %v1628_v54 = vld [vmem:[#allocation4 + $0x200] ss:$8 sps:$4 sm:$0xff]   ;;  %v1633_v55 = vld [vmem:[#allocation4 + $0x214] ss:$8 sps:$4 sm:$0xff]   ;;  %v103_v56 = vpack.c.bf16 %v95_v50, %v87_v49 }
  0x5c   :  { %924 = vmatprep.subr.bf16.mxu0 %v1595_v10  ;;  %v1705_v57 = vld [vmem:[#allocation4 + $0x60] ss:$8 sps:$4 sm:$0xff]   ;;  %v1709_v58 = vld [vmem:[#allocation4 + $0x74] ss:$8 sps:$4 sm:$0xff]   ;;  %v1631_v59 = vld [vmem:[#allocation4 + $0x210] ss:$8 sps:$4 sm:$0xff]  }
  0x5d   :  { %v1636_v60 = vld [vmem:[#allocation4 + $0x224] ss:$8 sps:$4 sm:$0xff]   ;;  %v1711_v61 = vld [vmem:[#allocation4 + $0x70] ss:$8 sps:$4 sm:$0xff]   ;;  %v1634_v63 = vld [vmem:[#allocation4 + $0x220] ss:$8 sps:$4 sm:$0xff]  }
  0x5e   :  { %878 = vmatpush1.bf16.msra.mxu1 %v1687_v39  ;;  %v1715_v62 = vld [vmem:[#allocation4 + $0x84] ss:$8 sps:$4 sm:$0xff]   ;;  %v1639_v0 = vld [vmem:[#allocation4 + $0x234] ss:$8 sps:$4 sm:$0xff]   ;;  %v1717_v1 = vld [vmem:[#allocation4 + $0x80] ss:$8 sps:$4 sm:$0xff]  }
  0x5f   :  { %925 = vmatpush1.bf16.msra.mxu0 %v1597_v11  ;;  %879 = vmatprep.subr.bf16.mxu1 %v1691_v40  ;;  %v1721_v2 = vld [vmem:[#allocation4 + $0x94] ss:$8 sps:$4 sm:$0xff]   ;;  %v1637_v3 = vld [vmem:[#allocation4 + $0x230] ss:$8 sps:$4 sm:$0xff]   ;;  %v1642_v4 = vld [vmem:[#allocation4 + $0x244] ss:$8 sps:$4 sm:$0xff]  }
  0x60   :  { %926 = vmatprep.subr.bf16.mxu0 %v1598_v12  ;;  %v1723_v5 = vld [vmem:[#allocation4 + $0x90] ss:$8 sps:$4 sm:$0xff]   ;;  %v1727_v6 = vld [vmem:[#allocation4 + $0xa4] ss:$8 sps:$4 sm:$0xff]   ;;  %v1640_v7 = vld [vmem:[#allocation4 + $0x240] ss:$8 sps:$4 sm:$0xff]  }
  0x61   :  { %v1645_v8 = vld [vmem:[#allocation4 + $0x254] ss:$8 sps:$4 sm:$0xff]   ;;  %v1729_v9 = vld [vmem:[#allocation4 + $0xa0] ss:$8 sps:$4 sm:$0xff]   ;;  %v1643_v11 = vld [vmem:[#allocation4 + $0x250] ss:$8 sps:$4 sm:$0xff]  }
  0x62   :  { %880 = vmatpush1.bf16.msra.mxu1 %v1693_v43  ;;  %v1733_v10 = vld [vmem:[#allocation4 + $0xb4] ss:$8 sps:$4 sm:$0xff]   ;;  %v1648_v12 = vld [vmem:[#allocation4 + $0x264] ss:$8 sps:$4 sm:$0xff]   ;;  %v1735_v13 = vld [vmem:[#allocation4 + $0xb0] ss:$8 sps:$4 sm:$0xff]  }
  0x63   :  { %927 = vmatpush1.bf16.msra.mxu0 %v1600_v16  ;;  %881 = vmatprep.subr.bf16.mxu1 %v1697_v44  ;;  %v83_v14 = vld [vmem:[#allocation2 + $0x8] sm:$0xff]  ;;  %v1657_v27 = vld [vmem:[#allocation4 + $0x294] ss:$8 sps:$4 sm:$0xff]   ;;  %v1655_v30 = vld [vmem:[#allocation4 + $0x290] ss:$8 sps:$4 sm:$0xff]  }
  0x64   :  { %928 = vmatprep.subr.bf16.mxu0 %v1601_v17  ;;  %v91_v15 = vld [vmem:[#allocation2 + $0x48] sm:$0xff]  ;;  %v1757_v29 = vld [vmem:[#allocation4 + $0xf4] ss:$8 sps:$4 sm:$0xff]   ;;  %v1670_v49 = vld [vmem:[#allocation4 + $0x2d0] ss:$8 sps:$4 sm:$0xff]  }
  0x65   :  { %v1739_v16 = vld [vmem:[#allocation4 + $0xc4] ss:$8 sps:$4 sm:$0xff]   ;;  %v99_v17 = vpack.c.bf16 %v91_v15, %v83_v14  ;;  %v1652_v26 = vld [vmem:[#allocation4 + $0x280] ss:$8 sps:$4 sm:$0xff]   ;;  %v1770_v44 = vld [vmem:[#allocation6 + $0x50] sm:$0xff]  }
  0x66   :  { %882 = vmatpush1.bf16.msra.mxu1 %v1699_v51  ;;  %v1658_v36 = vld [vmem:[#allocation4 + $0x2a0] ss:$8 sps:$4 sm:$0xff]   ;;  %v1672_v46 = vld [vmem:[#allocation4 + $0x2d4] ss:$8 sps:$4 sm:$0xff]   ;;  %v1678_v50 = vld [vmem:[#allocation4 + $0x2e4] ss:$8 sps:$4 sm:$0xff]  }
  0x67   :  { %929 = vmatpush1.bf16.msra.mxu0 %v1603_v18  ;;  %883 = vmatprep.subr.bf16.mxu1 %v1703_v52  ;;  %v1646_v18 = vld [vmem:[#allocation4 + $0x260] ss:$8 sps:$4 sm:$0xff]   ;;  %v1772_v48 = vld [vmem:[#allocation6 + $0x58] sm:$0xff]  }
  0x68   :  { %930 = vmatprep.subr.bf16.mxu0 %v1604_v19  ;;  %v1651_v19 = vld [vmem:[#allocation4 + $0x274] ss:$8 sps:$4 sm:$0xff]   ;;  %903 = vmatprep.mubr.bf16.mxu1 %v99_v17  ;;  %v1768_v40 = vld [vmem:[#allocation6 + $0x48] sm:$0xff]  }
  0x69   :  { %v1769_v43 = vld [vmem:[#allocation6 + $0x8] sm:$0xff]   ;;  %v1773_v51 = vld [vmem:[#allocation6 + $0x18] sm:$0xff]  }
  0x6a   :  { %884 = vmatpush1.bf16.msra.mxu1 %v1705_v57  ;;  %v1676_v52 = vld [vmem:[#allocation4 + $0x2e0] ss:$8 sps:$4 sm:$0xff]   ;;  %v1690_v57 = vld [vmem:[#allocation4 + $0x304] ss:$8 sps:$4 sm:$0xff]   ;;  %v1744_v15 = vld [vmem:[#allocation4 + $0x394] ss:$8 sps:$4 sm:$0xff]  }
  0x6b   :  { %931 = vmatpush1.bf16.msra.mxu0 %v1606_v20  ;;  %885 = vmatprep.subr.bf16.mxu1 %v1709_v58  ;;  %v1741_v20 = vld [vmem:[#allocation4 + $0xc0] ss:$8 sps:$4 sm:$0xff]   ;;  %v89_v58 = vld [vmem:[#allocation2 + $0x38] sm:$0xff]  ;;  %v1750_v17 = vld [vmem:[#allocation4 + $0x3a4] ss:$8 sps:$4 sm:$0xff]  }
  0x6c   :  { %932 = vmatprep.subr.bf16.mxu0 %v1607_v21  ;;  %v1745_v21 = vld [vmem:[#allocation4 + $0xd4] ss:$8 sps:$4 sm:$0xff]   ;;  %v1736_v14 = vld [vmem:[#allocation4 + $0x380] ss:$8 sps:$4 sm:$0xff]  }
  0x6e   :  { %886 = vmatpush1.bf16.msra.mxu1 %v1711_v61  ;;  %v1688_v61 = vld [vmem:[#allocation4 + $0x300] ss:$8 sps:$4 sm:$0xff]  }
  0x6f   :  { %933 = vmatpush1.bf16.msra.mxu0 %v1609_v22  ;;  %887 = vmatprep.subr.bf16.mxu1 %v1715_v62  ;;  %v1649_v22 = vld [vmem:[#allocation4 + $0x270] ss:$8 sps:$4 sm:$0xff]  }
  0x70   :  { %934 = vmatprep.subr.bf16.mxu0 %v1610_v23  ;;  %v1654_v23 = vld [vmem:[#allocation4 + $0x284] ss:$8 sps:$4 sm:$0xff]  }
  0x72   :  { %888 = vmatpush1.bf16.msra.mxu1 %v1717_v1  ;;  %v1702_v1 = vld [vmem:[#allocation4 + $0x324] ss:$8 sps:$4 sm:$0xff]  }
  0x73   :  { %935 = vmatpush1.bf16.msra.mxu0 %v1612_v24  ;;  %889 = vmatprep.subr.bf16.mxu1 %v1721_v2  ;;  %v1747_v24 = vld [vmem:[#allocation4 + $0xd0] ss:$8 sps:$4 sm:$0xff]   ;;  %v1700_v2 = vld [vmem:[#allocation4 + $0x320] ss:$8 sps:$4 sm:$0xff]  }
  0x74   :  { %936 = vmatprep.subr.bf16.mxu0 %v1613_v25  ;;  %v1751_v25 = vld [vmem:[#allocation4 + $0xe4] ss:$8 sps:$4 sm:$0xff]  }
  0x76   :  { %890 = vmatpush1.bf16.msra.mxu1 %v1723_v5  ;;  %v1714_v5 = vld [vmem:[#allocation4 + $0x344] ss:$8 sps:$4 sm:$0xff]  }
  0x77   :  { %937 = vmatpush1.bf16.msra.mxu0 %v1615_v28  ;;  %891 = vmatprep.subr.bf16.mxu1 %v1727_v6  ;;  %v1753_v28 = vld [vmem:[#allocation4 + $0xe0] ss:$8 sps:$4 sm:$0xff]  }
  0x78   :  { %938 = vmatprep.subr.bf16.mxu0 %v1616_v31  ;;  %v1660_v31 = vld [vmem:[#allocation4 + $0x2a4] ss:$8 sps:$4 sm:$0xff]   ;;  %v1712_v6 = vld [vmem:[#allocation4 + $0x340] ss:$8 sps:$4 sm:$0xff]  }
  0x7a   :  { %892 = vmatpush1.bf16.msra.mxu1 %v1729_v9  ;;  %v1726_v9 = vld [vmem:[#allocation4 + $0x364] ss:$8 sps:$4 sm:$0xff]  }
  0x7b   :  { %939 = vmatpush1.bf16.msra.mxu0 %v1618_v32  ;;  %893 = vmatprep.subr.bf16.mxu1 %v1733_v10  ;;  %v1759_v32 = vld [vmem:[#allocation4 + $0xf0] ss:$8 sps:$4 sm:$0xff]   ;;  %v1724_v10 = vld [vmem:[#allocation4 + $0x360] ss:$8 sps:$4 sm:$0xff]  }
  0x7c   :  { %940 = vmatprep.subr.bf16.mxu0 %v1619_v34  ;;  %v90_v34 = vld [vmem:[#allocation2 + $0x40] sm:$0xff] }
  0x7d   :  { %v98_v39 = vpack.c.bf16 %v90_v34, %v82_v33  ;;  %v1778_v33 = vld [vmem:[#allocation6 + $0x70] sm:$0xff]  }
  0x7e   :  { %894 = vmatpush1.bf16.msra.mxu1 %v1735_v13  ;;  %v1738_v13 = vld [vmem:[#allocation4 + $0x384] ss:$8 sps:$4 sm:$0xff]   ;;  %v1779_v34 = vld [vmem:[#allocation6 + $0x30] sm:$0xff]  }
  0x7f   :  { %941 = vmatpush1.bf16.msra.mxu0 %v1621_v37  ;;  %895 = vmatprep.subr.bf16.mxu1 %v1739_v16  ;;  %v1663_v37 = vld [vmem:[#allocation4 + $0x2b4] ss:$8 sps:$4 sm:$0xff]   ;;  %v1742_v16 = vld [vmem:[#allocation4 + $0x390] ss:$8 sps:$4 sm:$0xff]  }
  0x80   :  { %942 = vmatprep.subr.bf16.mxu0 %v1622_v38  ;;  %v1767_v38 = vld [vmem:[#allocation6] sm:$0xff]  }
  0x82   :  { %896 = vmatpush1.bf16.msra.mxu1 %v1741_v20  ;;  %v1754_v20 = vld [vmem:[#allocation4 + $0x3b0] ss:$8 sps:$4 sm:$0xff]  }
  0x83   :  { %943 = vmatpush1.bf16.msra.mxu0 %v1624_v41  ;;  %897 = vmatprep.subr.bf16.mxu1 %v1745_v21  ;;  %v1661_v41 = vld [vmem:[#allocation4 + $0x2b0] ss:$8 sps:$4 sm:$0xff]   ;;  %v1762_v21 = vld [vmem:[#allocation4 + $0x3c4] ss:$8 sps:$4 sm:$0xff]  }
  0x84   :  { %944 = vmatprep.subr.bf16.mxu0 %v1625_v42  ;;  %v1666_v42 = vld [vmem:[#allocation4 + $0x2c4] ss:$8 sps:$4 sm:$0xff]  }
  0x86   :  { %898 = vmatpush1.bf16.msra.mxu1 %v1747_v24  ;;  %v1765_v24 = vld [vmem:[#allocation4 + $0x3d0] ss:$8 sps:$4 sm:$0x3f]  }
  0x87   :  { %945 = vmatpush1.bf16.msra.mxu0 %v1627_v45  ;;  %899 = vmatprep.subr.bf16.mxu1 %v1751_v25  ;;  %v1664_v45 = vld [vmem:[#allocation4 + $0x2c0] ss:$8 sps:$4 sm:$0xff]   ;;  %v88_v25 = vld [vmem:[#allocation2 + $0x30] sm:$0xff] }
  0x88   :  { %957 = vmatprep.subr.bf16.mxu0 %v1630_v47  ;;  %v1771_v47 = vld [vmem:[#allocation6 + $0x10] sm:$0xff]  }
  0x8a   :  { %947 = vmatmul.mubr.bf16.vlgmr.msra.gmra.mrb[0].mxu0 %v100_v53  ;;  %900 = vmatpush1.bf16.msra.mxu1 %v1753_v28  ;;  %v1684_v53 = vld [vmem:[#allocation4 + $0x2f4] ss:$8 sps:$4 sm:$0xff]  }
  0x8b   :  { %958 = vmatpush1.bf16.msra.mxu0 %v1628_v54  ;;  %989 = vmatprep.mubr.bf16.mxu0 %v103_v56  ;;  %v1682_v54 = vld [vmem:[#allocation4 + $0x2f0] ss:$8 sps:$4 sm:$0xff]   ;;  %v94_v56 = vld [vmem:[#allocation2 + $0x60] sm:$0xff] }
  0x8c   :  { %959 = vmatprep.subr.bf16.mxu0 %v1633_v55  ;;  %901 = vmatprep.subr.bf16.mxu1 %v1757_v29  ;;  %v86_v55 = vld [vmem:[#allocation2 + $0x20] sm:$0xff] }
  0x8d   :  { %v1774_v29 = vld [vmem:[#allocation6 + $0x60] sm:$0xff]  }
  0x8e   :  { %902 = vmatpush1.bf16.msra.mxu1 %v1759_v32  ;;  %v1777_v32 = vld [vmem:[#allocation6 + $0x28] sm:$0xff]  }
  0x8f   :  { %960 = vmatpush1.bf16.msra.mxu0 %v1631_v59  ;;  %1502 = vmatprep.subr.bf16.mxu1 %v1766_v35  ;;  %v97_v59 = vld [vmem:[#allocation2 + $0x78] sm:$0xff] }
  0x90   :  { %961 = vmatprep.subr.bf16.mxu0 %v1636_v60  ;;  %v102_v60 = vpack.c.bf16 %v94_v56, %v86_v55  ;;  %v105_v62 = vpack.c.bf16 %v97_v59, %v89_v58  ;;  %v1780_v35 = vld [vmem:[#allocation6 + $0x78] sm:$0xff]  }
  0x91   :  { %904 = vmatmul.mubr.bf16.vlgmr.msra.gmra.mrb[0].mxu1 %v98_v39 }
  0x92   :  { %1503 = vmatpush3.bf16.msra.mxu1 %v1767_v38 }
  0x93   :  { %962 = vmatpush1.bf16.msra.mxu0 %v1634_v63  ;;  %1504 = vmatprep.subr.bf16.mxu1 %v1768_v40  ;;  %v1696_v63 = vld [vmem:[#allocation4 + $0x314] ss:$8 sps:$4 sm:$0xff]  }
  0x94   :  { %963 = vmatprep.subr.bf16.mxu0 %v1639_v0  ;;  %v1694_v0 = vld [vmem:[#allocation4 + $0x310] ss:$8 sps:$4 sm:$0xff]  }
  0x96   :  { %1505 = vmatpush3.bf16.msra.mxu1 %v1769_v43 }
  0x97   :  { %964 = vmatpush1.bf16.msra.mxu0 %v1637_v3  ;;  %1506 = vmatprep.subr.bf16.mxu1 %v1770_v44  ;;  %v1708_v3 = vld [vmem:[#allocation4 + $0x334] ss:$8 sps:$4 sm:$0xff]  }
  0x98   :  { %965 = vmatprep.subr.bf16.mxu0 %v1642_v4  ;;  %v1706_v4 = vld [vmem:[#allocation4 + $0x330] ss:$8 sps:$4 sm:$0xff]  }
  0x9a   :  { %1507 = vmatpush3.bf16.msra.mxu1 %v1771_v47 }
  0x9b   :  { %966 = vmatpush1.bf16.msra.mxu0 %v1640_v7  ;;  %1508 = vmatprep.subr.bf16.mxu1 %v1772_v48  ;;  %v1720_v7 = vld [vmem:[#allocation4 + $0x354] ss:$8 sps:$4 sm:$0xff]  }
  0x9c   :  { %967 = vmatprep.subr.bf16.mxu0 %v1645_v8  ;;  %v1718_v8 = vld [vmem:[#allocation4 + $0x350] ss:$8 sps:$4 sm:$0xff]  }
  0x9e   :  { %1509 = vmatpush3.bf16.msra.mxu1 %v1773_v51 }
  0x9f   :  { %968 = vmatpush1.bf16.msra.mxu0 %v1643_v11  ;;  %v1732_v11 = vld [vmem:[#allocation4 + $0x374] ss:$8 sps:$4 sm:$0xff]   ;;  %1510 = vmatprep.subr.bf16.mxu1 %v1774_v29 }
  0xa0   :  { %969 = vmatprep.subr.bf16.mxu0 %v1648_v12  ;;  %v1730_v12 = vld [vmem:[#allocation4 + $0x370] ss:$8 sps:$4 sm:$0xff]  }
  0xa3   :  { %970 = vmatpush1.bf16.msra.mxu0 %v1646_v18  ;;  %v1748_v18 = vld [vmem:[#allocation4 + $0x3a0] ss:$8 sps:$4 sm:$0xff]  }
  0xa4   :  { %971 = vmatprep.subr.bf16.mxu0 %v1651_v19  ;;  %v1756_v19 = vld [vmem:[#allocation4 + $0x3b4] ss:$8 sps:$4 sm:$0xff]  }
  0xa7   :  { %972 = vmatpush1.bf16.msra.mxu0 %v1649_v22  ;;  %v1760_v22 = vld [vmem:[#allocation4 + $0x3c0] ss:$8 sps:$4 sm:$0xff]  }
  0xa8   :  { %973 = vmatprep.subr.bf16.mxu0 %v1654_v23  ;;  %v1763_v23 = vld [vmem:[#allocation4 + $0x3d4] ss:$8 sps:$4 sm:$0x3f]  }
  0xab   :  { %974 = vmatpush1.bf16.msra.mxu0 %v1652_v26  ;;  %v96_v26 = vld [vmem:[#allocation2 + $0x70] sm:$0xff] }
  0xac   :  { %975 = vmatprep.subr.bf16.mxu0 %v1657_v27  ;;  %v866_v27 = vsel %vm864_vm1, %v1765_v24, 0  ;;  %v104_v28 = vpack.c.bf16 %v96_v26, %v88_v25 }
  0xaf   :  { %976 = vmatpush1.bf16.msra.mxu0 %v1655_v30  ;;  %v1775_v30 = vld [vmem:[#allocation6 + $0x20] sm:$0xff]  }
  0xb0   :  { %977 = vmatprep.subr.bf16.mxu0 %v1660_v31  ;;  %1511 = vmatpush3.bf16.msra.mxu1 %v1775_v30  ;;  %v1776_v31 = vld [vmem:[#allocation6 + $0x68] sm:$0xff]  }
  0xb1   :  { %1512 = vmatprep.subr.bf16.mxu1 %v1776_v31 }
  0xb3   :  { %978 = vmatpush1.bf16.msra.mxu0 %v1658_v36  ;;  %v1781_v36 = vld [vmem:[#allocation6 + $0x38] sm:$0xff]  }
  0xb4   :  { %979 = vmatprep.subr.bf16.mxu0 %v1663_v37  ;;  %1513 = vmatpush3.bf16.msra.mxu1 %v1777_v32  ;;  %v1893_v37 = vmov 0.0  }
  0xb5   :  { %1514 = vmatprep.subr.bf16.mxu1 %v1778_v33 }
  0xb7   :  { %980 = vmatpush1.bf16.msra.mxu0 %v1661_v41 }
  0xb8   :  { %981 = vmatprep.subr.bf16.mxu0 %v1666_v42  ;;  %1515 = vmatpush3.bf16.msra.mxu1 %v1779_v34  ;;  %v232_v42 = vlaneseq }
  0xb9   :  { %1516 = vmatprep.subr.bf16.mxu1 %v1780_v35 }
  0xba   :  { %v233_v43 = vshrl.u32 %v232_v42, 7 }
  0xbb   :  { %982 = vmatpush1.bf16.msra.mxu0 %v1664_v45  ;;  %v230_v45 = vld [vmem:[%s2005_s2] sm:$0x3] }
  0xbc   :  { %983 = vmatprep.subr.bf16.mxu0 %v1672_v46  ;;  %1517 = vmatpush3.bf16.msra.mxu1 %v1781_v36  ;;  %v234_v44 = vsub.s32 0, %v233_v43  ;;  %v238_v46 = vsub.s32 1, %v233_v43 }
  0xbd   :  { %1533 = vmatprep.subr.bf16.mxu1 %v1893_v37 }
  0xbe   :  { %v235_v47 = vrot.slane %v230_v45, %v234_v44  ;;  %v239_v48 = vrot.slane %v230_v45, %v238_v46 }
  0xbf   :  { %984 = vmatpush1.bf16.msra.mxu0 %v1670_v49 }
  0xc0   :  { %985 = vmatprep.subr.bf16.mxu0 %v1678_v50 }
  0xc3   :  { %986 = vmatpush1.bf16.msra.mxu0 %v1676_v52 }
  0xc4   :  { %987 = vmatprep.subr.bf16.mxu0 %v1684_v53 }
  0xc7   :  { %988 = vmatpush1.bf16.msra.mxu0 %v1682_v54 }
  0xc8   :  { %1000 = vmatprep.subr.bf16.mxu0 %v1690_v57 }
  0xca   :  { %990 = vmatmul.mubr.bf16.vlgmr.msra.gmra.mrb[0].mxu0 %v102_v60 }
  0xcb   :  { %1001 = vmatpush1.bf16.msra.mxu0 %v1688_v61  ;;  %1475 = vmatprep.mubr.msk.bf16.mxu0 %vm860_vm0, %v105_v62 }
  0xcc   :  { %1002 = vmatprep.subr.bf16.mxu0 %v1696_v63 }
  0xcf   :  { %1003 = vmatpush1.bf16.msra.mxu0 %v1694_v0 }
  0xd0   :  { %1004 = vmatprep.subr.bf16.mxu0 %v1702_v1 }
  0xd3   :  { %1005 = vmatpush1.bf16.msra.mxu0 %v1700_v2 }
  0xd4   :  { %1006 = vmatprep.subr.bf16.mxu0 %v1708_v3  ;;  %v1782_v3 = vld [vmem:[#allocation7] sm:$0xff]  }
  0xd7   :  { %1007 = vmatpush1.bf16.msra.mxu0 %v1706_v4  ;;  %v1783_v4 = vld [vmem:[#allocation7 + $0x8] sm:$0xff]  }
  0xd8   :  { %1008 = vmatprep.subr.bf16.mxu0 %v1714_v5  ;;  %v1784_v5 = vld [vmem:[#allocation7 + $0x10] sm:$0xff]  }
  0xdb   :  { %1009 = vmatpush1.bf16.msra.mxu0 %v1712_v6  ;;  %v1785_v6 = vld [vmem:[#allocation7 + $0x18] sm:$0xff]  }
  0xdc   :  { %1010 = vmatprep.subr.bf16.mxu0 %v1720_v7  ;;  %v1786_v7 = vld [vmem:[#allocation7 + $0x20] sm:$0xff]  }
  0xdf   :  { %1011 = vmatpush1.bf16.msra.mxu0 %v1718_v8  ;;  %v1787_v8 = vld [vmem:[#allocation7 + $0x28] sm:$0xff]  }
  0xe0   :  { %1012 = vmatprep.subr.bf16.mxu0 %v1726_v9  ;;  %v1788_v9 = vld [vmem:[#allocation7 + $0x30] sm:$0xff]  }
  0xe3   :  { %1013 = vmatpush1.bf16.msra.mxu0 %v1724_v10  ;;  %v1789_v10 = vld [vmem:[#allocation7 + $0x38] sm:$0xff]  }
  0xe4   :  { %1014 = vmatprep.subr.bf16.mxu0 %v1732_v11 }
  0xe7   :  { %1015 = vmatpush1.bf16.msra.mxu0 %v1730_v12  ;;  %v1476_v12 = vld [vmem:[%s2007_s4] ss:$0 sm:$0xff] }
  0xe8   :  { %1016 = vmatprep.subr.bf16.mxu0 %v1738_v13 }
  0xeb   :  { %1017 = vmatpush1.bf16.msra.mxu0 %v1736_v14 }
  0xec   :  { %1018 = vmatprep.subr.bf16.mxu0 %v1744_v15 }
  0xef   :  { %1019 = vmatpush1.bf16.msra.mxu0 %v1742_v16 }
  0xf0   :  { %1020 = vmatprep.subr.bf16.mxu0 %v1750_v17 }
  0xf3   :  { %1021 = vmatpush1.bf16.msra.mxu0 %v1748_v18 }
  0xf4   :  { %1022 = vmatprep.subr.bf16.mxu0 %v1756_v19 }
  0xf7   :  { %1023 = vmatpush1.bf16.msra.mxu0 %v1754_v20 }
  0xf8   :  { %1024 = vmatprep.subr.bf16.mxu0 %v1762_v21 }
  0xfb   :  { %1025 = vmatpush1.bf16.msra.mxu0 %v1760_v22 }
  0xfc   :  { %1474 = vmatprep.subr.msk.bf16.mxu0 %vm864_vm1, %v1763_v23  ;;  %v1493_v23 = vld [vmem:[%s2009_s6] ss:$0 sm:$0xff] }
  0xff   :  { %1027 = vmatpush1.bf16.msra.mxu0 %v866_v27 }
 0x102   :  { %1033 = vmatmul.mubr.bf16.vlgmr.msra.gmra.mrb[0].mxu0 %v104_v28 }
 0x164   :  { %v905_v38 = vpop.f32.mrb[0].mxu1 }
 0x165   :  { %v907_v39 = vpop.f32.mrb[1].mxu1  ;;  %v906_v49 = vadd.f32 %v905_v38, %v235_v47 }
 0x166   :  { %v909_v40 = vpop.f32.mrb[2].mxu1  ;;  %v908_v50 = vadd.f32 %v907_v39, %v239_v48 }
 0x167   :  { %v911_v41 = vpop.f32.mrb[3].mxu1  ;;  %v910_v52 = vadd.f32 %v909_v40, %v235_v47 }
 0x168   :  { %v912_v55 = vadd.f32 %v911_v41, %v239_v48 }
 0x1d5   :  { %v1034_v51 = vpop.f32.mrb[0].mxu0 }
 0x1d6   :  { %v1554_v53 = vadd.f32 %v1034_v51, %v906_v49  ;;  %v1036_v54 = vpop.f32.mrb[1].mxu0 }
 0x1d7   :  { %v1556_v56 = vadd.f32 %v1036_v54, %v908_v50  ;;  %v1038_v57 = vpop.f32.mrb[2].mxu0 }
 0x1d8   :  { %v1558_v58 = vadd.f32 %v1038_v57, %v910_v52  ;;  %v1040_v59 = vpop.f32.mrb[3].mxu0  ;;  %v1043_v61 = vmax.f32 %v1554_v53, 0.0 }
 0x1d9   :  { %v1560_v60 = vadd.f32 %v1040_v59, %v912_v55  ;;  %v1044_v63 = vmax.f32 %v1556_v56, 0.0 }
 0x1da   :  { %v1045_v62 = vmax.f32 %v1558_v58, 0.0 }
 0x1db   :  { %v1046_v0 = vmax.f32 %v1560_v60, 0.0 }
 0x1dc   :  { %v1047_v1 = vpack.c.bf16 %v1045_v62, %v1043_v61 }
 0x1dd   :  { %v1048_v2 = vpack.c.bf16 %v1046_v0, %v1044_v63 }
 0x1df   :  { %1216 = vmatprep.mubr.bf16.mxu1 %v1048_v2 }
 0x1e0   :  { %1217 = vmatmul.mubr.bf16.vlgmr.msra.gmra.mrb[4].mxu1 %v1047_v1 }
 0x1e1   :  { %1534 = vmatpush3.bf16.msra.mxu1 %v1782_v3  ;;  %1549 = vmatprep.mubr.msk.bf16.mxu1 %vm1894_vm2, %v1893_v37 }
 0x1e2   :  { %1535 = vmatprep.subr.bf16.mxu1 %v1893_v37 }
 0x1e5   :  { %1536 = vmatpush3.bf16.msra.mxu1 %v1783_v4 }
 0x1e6   :  { %1537 = vmatprep.subr.bf16.mxu1 %v1893_v37 }
 0x1e9   :  { %1538 = vmatpush3.bf16.msra.mxu1 %v1784_v5 }
 0x1ea   :  { %1539 = vmatprep.subr.bf16.mxu1 %v1893_v37 }
 0x1ed   :  { %1540 = vmatpush3.bf16.msra.mxu1 %v1785_v6 }
 0x1ee   :  { %1541 = vmatprep.subr.bf16.mxu1 %v1893_v37 }
 0x1f1   :  { %1542 = vmatpush3.bf16.msra.mxu1 %v1786_v7 }
 0x1f2   :  { %1543 = vmatprep.subr.bf16.mxu1 %v1893_v37 }
 0x1f5   :  { %1544 = vmatpush3.bf16.msra.mxu1 %v1787_v8 }
 0x1f6   :  { %1545 = vmatprep.subr.bf16.mxu1 %v1893_v37 }
 0x1f9   :  { %1546 = vmatpush3.bf16.msra.mxu1 %v1788_v9 }
 0x1fa   :  { %1547 = vmatprep.subr.bf16.mxu1 %v1893_v37 }
 0x1fd   :  { %1548 = vmatpush3.bf16.msra.mxu1 %v1789_v10 }
 0x2b3   :  { %v1518_v11 = vpop.f32.mrb[4].mxu1 }
 0x2b4   :  { %v1519_v13 = vpop.f32.mrb[5].mxu1 }
 0x2b5   :  { %v1520_v14 = vadd.f32 %v1519_v13, %v1518_v11  ;;  %v1521_v15 = vpop.f32.mrb[6].mxu1 }
 0x2b6   :  { %v1522_v16 = vpop.f32.mrb[7].mxu1 }
 0x2b7   :  { %v1219_v17 = vadd.f32 %v1520_v14, %v1476_v12  ;;  %v1523_v18 = vadd.f32 %v1522_v16, %v1521_v15 }
 0x2b9   :  { %v1222_v19 = vadd.f32 %v1523_v18, %v1476_v12  ;;  %v1225_v20 = vmax.f32 %v1219_v17, 0.0 }
 0x2bb   :  { %v1226_v21 = vmax.f32 %v1222_v19, 0.0 }
 0x2bd   :  { %v1227_v22 = vpack.c.bf16 %v1226_v21, %v1225_v20 }
 0x2bf   :  { %1550 = vmatmul.mubr.bf16.vlgmr.msra.gmra.mrb[8].mxu1 %v1227_v22 }
 0x392   :  { %v1333_v24 = vpop.f32.mrb[8].mxu1 }
 0x393   :  { %v1334_v25 = vadd.f32 %v1493_v23, %v1333_v24  ;;  %v1551_v26 = vpop.f32.mrb[9].mxu1 }
 0x394   :  { %v1336_v27 = vpop.f32.mrb[10].mxu1 }
 0x395   :  { %1341 = vst.msk [vmem:[%s2010_s7] sm:$0xff] %vm1340_vm3, %v1334_v25  ;;  %v1337_v28 = vadd.f32 %v1493_v23, %v1336_v27  ;;  %v1552_v29 = vpop.f32.mrb[11].mxu1 }
 0x397   :  { %1342 = vst.msk [vmem:[%s2010_s7 + $0x8] sm:$0xff] %vm1340_vm3, %v1337_v28 }
 0x398   :  { %1347 = vsyncpa [#allocation3], 1 }
 0x399   :  { %1348 = vsyncpa [#allocation5], 1 }
 0x39a   :  { %1349 = vsyncpa [#allocation8], 1 }

</bundles_post_ra>
